<compile_context>
chip_gen: v7x
topology: tpu7x:2x2x1
jax: 0.10.0
libtpu: 0.0.40
codegen_flags: <defaults>
</compile_context>

<pallas_src>
import jax
import jax.numpy as jnp
import numpy as np
from jax.experimental import pallas as pl
from jax.experimental.pallas import tpu as pltpu

ROW_TILE = 128  # node-row tile (8-sublane aligned, MXU-friendly); node counts padded to multiple


def _elu(x):
    # exp argument clamped so the discarded branch cannot overflow
    return jnp.where(x > 0, x, jnp.exp(jnp.minimum(x, 0.0)) - 1.0)


def _round_up(n, m):
    return ((n + m - 1) // m) * m


def _pad_rows(x, n_pad):
    n = x.shape[0]
    if n == n_pad:
        return x
    return jnp.pad(x, ((0, n_pad - n), (0, 0)))


# ---------------------------------------------------------------------------
# Kernel A (per node type): fused self-transform + folded attention projections
#   z   = x @ W_self + b_self
#   h_r = sum(z * wq_eff, -1) + c_q            (= W_ar(linear_q(z)))
#   s0  = h_r + sum(z * wk_eff, -1) + c_k      (= W_al(linear_k(z)) + h_r, pre-ELU self score)
# ---------------------------------------------------------------------------
def _self_attn_kernel(x_ref, w_ref, b_ref, wqk_ref, cqk_ref, z_ref, hr_ref, s0_ref):
    z = (jnp.dot(x_ref[...], w_ref[...], preferred_element_type=jnp.float32)
         + b_ref[...])                                                   # [tile, dout] f32
    z_ref[...] = z
    hr = jnp.sum(z * wqk_ref[0:1, :], axis=-1, keepdims=True) + cqk_ref[0]
    hl = jnp.sum(z * wqk_ref[1:2, :], axis=-1, keepdims=True) + cqk_ref[1]
    hr_ref[...] = hr
    s0_ref[...] = hr + hl


def self_attn_pallas(x, w_self, b_self, w_qk, c_qk):
    n, din = x.shape
    dout = w_self.shape[1]
    return pl.pallas_call(
        _self_attn_kernel,
        out_shape=(
            jax.ShapeDtypeStruct((n, dout), jnp.float32),
            jax.ShapeDtypeStruct((n, 1), jnp.float32),
            jax.ShapeDtypeStruct((n, 1), jnp.float32),
        ),
        grid=(n // ROW_TILE,),
        in_specs=[
            pl.BlockSpec((ROW_TILE, din), lambda i: (i, 0)),
            pl.BlockSpec((din, dout), lambda i: (0, 0)),
            pl.BlockSpec((1, dout), lambda i: (0, 0)),
            pl.BlockSpec((2, dout), lambda i: (0, 0)),
            pl.BlockSpec(memory_space=pltpu.MemorySpace.SMEM),   # (2,) scalar constants
        ],
        out_specs=(
            pl.BlockSpec((ROW_TILE, dout), lambda i: (i, 0)),
            pl.BlockSpec((ROW_TILE, 1), lambda i: (i, 0)),
            pl.BlockSpec((ROW_TILE, 1), lambda i: (i, 0)),
        ),
        compiler_params=pltpu.CompilerParams(dimension_semantics=("parallel",)),
    )(x, w_self, b_self, w_qk, c_qk)


# ---------------------------------------------------------------------------
# Kernel B (per canonical edge type): fused GraphConv (norm='right') + edge attention score
#   dst = adj_norm @ (x_src @ W_conv) + b_conv
#   s_e = sum(dst * wk_eff, -1) + c_k + h_r(dst type)
# dst stays in VMEM/vregs between the conv and the score (no HBM round trip).
# ---------------------------------------------------------------------------
def _gconv_score_kernel(adj_ref, x_ref, w_ref, b_ref, wk_ref, ck_ref, hr_ref,
                        d_ref, s_ref):
    xw = jnp.dot(x_ref[...], w_ref[...], preferred_element_type=jnp.float32)
    dst = (jnp.dot(adj_ref[...], xw.astype(jnp.bfloat16),
                   preferred_element_type=jnp.float32) + b_ref[...])
    d_ref[...] = dst
    s_ref[...] = (jnp.sum(dst * wk_ref[...], axis=-1, keepdims=True)
                  + ck_ref[0] + hr_ref[...])


def gconv_score_pallas(adj, x_src, w_conv, b_conv, wk_eff, c_k, h_r):
    nd, ns = adj.shape
    din = x_src.shape[1]
    dout = w_conv.shape[1]
    return pl.pallas_call(
        _gconv_score_kernel,
        out_shape=(
            jax.ShapeDtypeStruct((nd, dout), jnp.float32),
            jax.ShapeDtypeStruct((nd, 1), jnp.float32),
        ),
        grid=(nd // ROW_TILE,),
        in_specs=[
            pl.BlockSpec((ROW_TILE, ns), lambda i: (i, 0)),
            pl.BlockSpec((ns, din), lambda i: (0, 0)),
            pl.BlockSpec((din, dout), lambda i: (0, 0)),
            pl.BlockSpec((1, dout), lambda i: (0, 0)),
            pl.BlockSpec((1, dout), lambda i: (0, 0)),
            pl.BlockSpec(memory_space=pltpu.MemorySpace.SMEM),   # (1,) scalar constant
            pl.BlockSpec((ROW_TILE, 1), lambda i: (i, 0)),
        ],
        out_specs=(
            pl.BlockSpec((ROW_TILE, dout), lambda i: (i, 0)),
            pl.BlockSpec((ROW_TILE, 1), lambda i: (i, 0)),
        ),
        compiler_params=pltpu.CompilerParams(dimension_semantics=("parallel",)),
    )(adj, x_src, w_conv, b_conv, wk_eff, c_k, h_r)


# ---------------------------------------------------------------------------
# Kernel C (per node type): attention softmax over K slots + weighted aggregation + final ELU
#   scores : [N, K] lane-adjacent slab (pre-ELU), data_k : [N, D] (k = 0..K-1)
#   o = elu( sum_k softmax_k(elu(scores))[:, k] * data_k )
# ---------------------------------------------------------------------------
def _make_attn_agg_kernel(k_slots):
    def kernel(s_ref, *refs):
        d_refs, o_ref = refs[:k_slots], refs[k_slots]
        s = _elu(s_ref[...])                               # [tile, K] f32
        cols = [s[:, k:k + 1] for k in range(k_slots)]     # K x [tile, 1]
        m = cols[0]
        for c in cols[1:]:
            m = jnp.maximum(m, c)
        exps = [jnp.exp(c - m) for c in cols]
        denom = exps[0]
        for e in exps[1:]:
            denom = denom + e
        inv = 1.0 / denom
        acc = d_refs[0][...] * (exps[0] * inv)
        for k in range(1, k_slots):
            acc = acc + d_refs[k][...] * (exps[k] * inv)
        o_ref[...] = _elu(acc)                             # _apply: activation = F.elu
    return kernel


def attn_agg_pallas(scores, data_list):
    n, k_slots = scores.shape
    d = data_list[0].shape[1]
    in_specs = [pl.BlockSpec((ROW_TILE, k_slots), lambda i: (i, 0))]
    in_specs += [pl.BlockSpec((ROW_TILE, d), lambda i: (i, 0)) for _ in range(k_slots)]
    return pl.pallas_call(
        _make_attn_agg_kernel(k_slots),
        out_shape=jax.ShapeDtypeStruct((n, d), jnp.float32),
        grid=(n // ROW_TILE,),
        in_specs=in_specs,
        out_specs=pl.BlockSpec((ROW_TILE, d), lambda i: (i, 0)),
        compiler_params=pltpu.CompilerParams(dimension_semantics=("parallel",)),
    )(scores, *data_list)


# ---------------------------------------------------------------------------
# Full ieHGCNConv forward (bias=False, batchnorm=False, dropout=0, activation=elu)
# ---------------------------------------------------------------------------
def ie_hgcn_conv_forward(h_dict, adj_norm, params, ntypes, canonical_etypes):
    n_true = {nt: h_dict[nt].shape[0] for nt in ntypes}
    n_pad = {nt: _round_up(n_true[nt], ROW_TILE) for nt in ntypes}

    # bf16 operands for the MXU, zero-padded rows sliced off at the end
    h_pad = {nt: _pad_rows(h_dict[nt], n_pad[nt]).astype(jnp.bfloat16) for nt in ntypes}

    h_r, scores, data = {}, {}, {}
    wk_eff, c_k_arr = {}, {}
    for nt in ntypes:
        # fold attention vectors into the q/k projections (removes [N, attn] intermediates)
        wq = params["w_q"][nt] @ params["w_ar"][nt]                      # [out]
        wk = params["w_k"][nt] @ params["w_al"][nt]                      # [out]
        c_q = params["b_q"][nt] @ params["w_ar"][nt] + params["b_ar"][nt][0]
        c_k = params["b_k"][nt] @ params["w_al"][nt] + params["b_al"][nt][0]
        w_qk = jnp.stack([wq, wk], axis=0).astype(jnp.float32)           # [2, out]
        c_qk = jnp.stack([c_q, c_k]).astype(jnp.float32)                 # [2]
        wk_eff[nt] = wk.reshape(1, -1).astype(jnp.float32)               # [1, out]
        c_k_arr[nt] = jnp.reshape(c_k, (1,)).astype(jnp.float32)         # [1]

        z_nt, hr_nt, s0_nt = self_attn_pallas(
            h_pad[nt],
            params["w_self"][nt].astype(jnp.bfloat16),
            params["b_self"][nt].reshape(1, -1).astype(jnp.float32),
            w_qk, c_qk)
        h_r[nt] = hr_nt
        scores[nt] = [s0_nt]
        data[nt] = [z_nt]

    for (srctype, etype, dsttype) in canonical_etypes:
        adj = adj_norm[etype]
        adj_p = jnp.pad(
            adj, ((0, n_pad[dsttype] - adj.shape[0]),
                  (0, n_pad[srctype] - adj.shape[1]))).astype(jnp.bfloat16)
        dstdata, s_e = gconv_score_pallas(
            adj_p, h_pad[srctype],
            params["w_conv"][etype].astype(jnp.bfloat16),
            params["b_conv"][etype].reshape(1, -1).astype(jnp.float32),
            wk_eff[dsttype], c_k_arr[dsttype], h_r[dsttype])
        data[dsttype].append(dstdata)
        scores[dsttype].append(s_e)

    out = {}
    for nt in ntypes:
        s_slab = jnp.concatenate(scores[nt], axis=1)   # [N_pad, K] lane-adjacent score slab
        out[nt] = attn_agg_pallas(s_slab, data[nt])[: n_true[nt]]
    return out


# ---------------------------------------------------------------------------
# Pure-JAX f32 reference (same math, unfused) for verification
# ---------------------------------------------------------------------------
def reference_forward(h_dict, adj_norm, params, ntypes, canonical_etypes):
    def lin(x, w, b):
        return x @ w + b

    z = {nt: lin(h_dict[nt], params["w_self"][nt], params["b_self"][nt]) for nt in ntypes}
    query = {nt: lin(z[nt], params["w_q"][nt], params["b_q"][nt]) for nt in ntypes}
    key = {nt: lin(z[nt], params["w_k"][nt], params["b_k"][nt]) for nt in ntypes}
    h_l = {nt: key[nt] @ params["w_al"][nt].reshape(-1, 1) + params["b_al"][nt] for nt in ntypes}
    h_r = {nt: query[nt] @ params["w_ar"][nt].reshape(-1, 1) + params["b_ar"][nt] for nt in ntypes}
    attention = {nt: [_elu(h_l[nt] + h_r[nt])] for nt in ntypes}
    outputs = {nt: [] for nt in ntypes}
    for (srctype, etype, dsttype) in canonical_etypes:
        dstdata = adj_norm[etype] @ (h_dict[srctype] @ params["w_conv"][etype]) \
            + params["b_conv"][etype]
        outputs[dsttype].append(dstdata)
        attn_k = lin(dstdata, params["w_k"][dsttype], params["b_k"][dsttype])
        h_attn = attn_k @ params["w_al"][dsttype].reshape(-1, 1) + params["b_al"][dsttype]
        attention[dsttype].append(_elu(h_attn + h_r[dsttype]))
    rst = {}
    for nt in ntypes:
        att = jax.nn.softmax(jnp.stack(attention[nt], axis=0), axis=0)
        dat = [z[nt]] + outputs[nt]
        acc = 0.0
        for i, d in enumerate(dat):
            acc = acc + d * att[i]
        rst[nt] = _elu(acc)
    return rst


if __name__ == "__main__":
    in_size, out_size, attn_size = 64, 128, 16
    ntypes = ["author", "paper"]
    num_nodes = {"author": 128, "paper": 256}
    canonical_etypes = [
        ("author", "writes", "paper"),
        ("paper", "written_by", "author"),
        ("paper", "cites", "paper"),
    ]
    etypes = [e for (_, e, _) in canonical_etypes]

    keys = iter(jax.random.split(jax.random.PRNGKey(0), 64))

    def nrm(shape, scale):
        return (scale * jax.random.normal(next(keys), shape)).astype(jnp.float32)

    # node features
    h_dict = {nt: nrm((num_nodes[nt], in_size), 1.0) for nt in ntypes}

    # deterministic synthetic parameters (shapes from ieHGCNConv.__init__)
    params = {
        "w_self": {}, "b_self": {},        # HeteroLinear(in_size -> out_size)
        "w_q": {}, "b_q": {},              # nn.Linear(out_size -> attn_size)
        "w_k": {}, "b_k": {},              # nn.Linear(out_size -> attn_size)
        "w_al": {}, "b_al": {},            # HeteroLinear(attn_size -> 1)
        "w_ar": {}, "b_ar": {},            # HeteroLinear(attn_size -> 1)
        "w_conv": {}, "b_conv": {},        # GraphConv weight/bias per etype
    }
    for nt in ntypes:
        params["w_self"][nt] = nrm((in_size, out_size), 1.0 / np.sqrt(in_size))
        params["b_self"][nt] = nrm((out_size,), 0.1)
        params["w_q"][nt] = nrm((out_size, attn_size), 1.0 / np.sqrt(out_size))
        params["b_q"][nt] = nrm((attn_size,), 0.1)
        params["w_k"][nt] = nrm((out_size, attn_size), 1.0 / np.sqrt(out_size))
        params["b_k"][nt] = nrm((attn_size,), 0.1)
        params["w_al"][nt] = nrm((attn_size,), 1.0 / np.sqrt(attn_size))
        params["b_al"][nt] = nrm((1,), 0.1)
        params["w_ar"][nt] = nrm((attn_size,), 1.0 / np.sqrt(attn_size))
        params["b_ar"][nt] = nrm((1,), 0.1)
    for et in etypes:
        params["w_conv"][et] = nrm((in_size, out_size), 1.0 / np.sqrt(in_size))
        params["b_conv"][et] = nrm((out_size,), 0.1)

    # dense, right-normalized adjacency per etype (dgl GraphConv norm='right',
    # allow_zero_in_degree=True: degree clamped to 1)
    adj_norm = {}
    for (s, e, d) in canonical_etypes:
        a = (jax.random.uniform(next(keys), (num_nodes[d], num_nodes[s])) < 0.4)
        a = a.astype(jnp.float32)
        deg = jnp.clip(jnp.sum(a, axis=1, keepdims=True), 1.0, None)
        adj_norm[e] = a / deg

    out = ie_hgcn_conv_forward(h_dict, adj_norm, params, ntypes, canonical_etypes)
    for nt in ntypes:
        jax.block_until_ready(out[nt])

    ref = reference_forward(h_dict, adj_norm, params, ntypes, canonical_etypes)
    for nt in ntypes:
        np.testing.assert_allclose(
            np.asarray(out[nt]), np.asarray(ref[nt]), rtol=5e-2, atol=5e-2)

    print("KERNEL_OK")
</pallas_src>

<mosaic_0001>
module attributes {stable_mosaic.version = 11 : i64} {
  func.func @_self_attn_kernel(%arg0: i32, %arg1: memref<128x64xbf16, #tpu.memory_space<vmem>>, %arg2: memref<64x128xbf16, #tpu.memory_space<vmem>>, %arg3: memref<1x128xf32, #tpu.memory_space<vmem>>, %arg4: memref<2x128xf32, #tpu.memory_space<vmem>>, %arg5: memref<2xf32, #tpu.memory_space<smem>>, %arg6: memref<128x128xf32, #tpu.memory_space<vmem>>, %arg7: memref<128x1xf32, #tpu.memory_space<vmem>>, %arg8: memref<128x1xf32, #tpu.memory_space<vmem>>) attributes {dimension_semantics = [#tpu.dimension_semantics<parallel>], iteration_bounds = array<i64: 1>, scalar_prefetch = 0 : i64, scratch_operands = 0 : i64, tpu.core_type = #tpu.core_type<tc>, window_params = [{transform_indices = @transform_0, window_bounds = array<i64: 128, 64>}, {pipeline_mode = #tpu.pipeline_mode<synchronous>, transform_indices = @transform_1, window_bounds = array<i64: 64, 128>}, {pipeline_mode = #tpu.pipeline_mode<synchronous>, transform_indices = @transform_2, window_bounds = array<i64: 1, 128>}, {pipeline_mode = #tpu.pipeline_mode<synchronous>, transform_indices = @transform_3, window_bounds = array<i64: 2, 128>}, {transform_indices = @transform_4, window_bounds = array<i64: 2>}, {transform_indices = @transform_5, window_bounds = array<i64: 128, 128>}, {transform_indices = @transform_6, window_bounds = array<i64: 128, 1>}, {transform_indices = @transform_7, window_bounds = array<i64: 128, 1>}]} {
    %c0 = arith.constant 0 : index
    %c0_0 = arith.constant 0 : index
    %0 = vector.load %arg1[%c0, %c0_0] : memref<128x64xbf16, #tpu.memory_space<vmem>>, vector<128x64xbf16>
    %c0_1 = arith.constant 0 : index
    %c0_2 = arith.constant 0 : index
    %1 = vector.load %arg2[%c0_1, %c0_2] : memref<64x128xbf16, #tpu.memory_space<vmem>>, vector<64x128xbf16>
    %cst = arith.constant dense<0.000000e+00> : vector<128x128xf32>
    %2 = tpu.matmul %0, %1, %cst {dimension_numbers = #tpu.dot_dimension_numbers<[1], [0], [0], [1], [0, 0, 1, 1], [], []>} : vector<128x64xbf16>, vector<64x128xbf16>, vector<128x128xf32> -> vector<128x128xf32>
    %c0_3 = arith.constant 0 : index
    %c0_4 = arith.constant 0 : index
    %3 = vector.load %arg3[%c0_3, %c0_4] : memref<1x128xf32, #tpu.memory_space<vmem>>, vector<1x128xf32>
    %4 = vector.broadcast %3 : vector<1x128xf32> to vector<128x128xf32>
    %5 = arith.addf %2, %4 : vector<128x128xf32>
    %c0_5 = arith.constant 0 : index
    %c0_6 = arith.constant 0 : index
    %6 = vector.load %arg6[%c0_5, %c0_6] : memref<128x128xf32, #tpu.memory_space<vmem>>, vector<128x128xf32>
    tpu.vector_store %arg6[%c0_5, %c0_6], %5 {strides = array<i32>} : memref<128x128xf32, #tpu.memory_space<vmem>>, vector<128x128xf32>,
    %c0_7 = arith.constant 0 : index
    %c0_8 = arith.constant 0 : index
    %7 = vector.load %arg4[%c0_7, %c0_8] : memref<2x128xf32, #tpu.memory_space<vmem>>, vector<1x128xf32>
    %8 = vector.broadcast %7 : vector<1x128xf32> to vector<128x128xf32>
    %9 = arith.mulf %5, %8 : vector<128x128xf32>
    %cst_9 = arith.constant dense<0.000000e+00> : vector<128xf32>
    %10 = vector.multi_reduction <add>, %9, %cst_9 [1] : vector<128x128xf32> to vector<128xf32>
    %11 = vector.shape_cast %10 : vector<128xf32> to vector<128x1xf32>
    %c0_10 = arith.constant 0 : index
    %12 = memref.load %arg5[%c0_10] : memref<2xf32, #tpu.memory_space<smem>>
    %13 = vector.broadcast %12 : f32 to vector<128x1xf32>
    %14 = arith.addf %11, %13 : vector<128x1xf32>
    %c1 = arith.constant 1 : index
    %c0_11 = arith.constant 0 : index
    %15 = vector.load %arg4[%c1, %c0_11] : memref<2x128xf32, #tpu.memory_space<vmem>>, vector<1x128xf32>
    %16 = vector.broadcast %15 : vector<1x128xf32> to vector<128x128xf32>
    %17 = arith.mulf %5, %16 : vector<128x128xf32>
    %cst_12 = arith.constant dense<0.000000e+00> : vector<128xf32>
    %18 = vector.multi_reduction <add>, %17, %cst_12 [1] : vector<128x128xf32> to vector<128xf32>
    %19 = vector.shape_cast %18 : vector<128xf32> to vector<128x1xf32>
    %c1_13 = arith.constant 1 : index
    %20 = memref.load %arg5[%c1_13] : memref<2xf32, #tpu.memory_space<smem>>
    %21 = vector.broadcast %20 : f32 to vector<128x1xf32>
    %22 = arith.addf %19, %21 : vector<128x1xf32>
    %c0_14 = arith.constant 0 : index
    %c0_15 = arith.constant 0 : index
    %23 = vector.load %arg7[%c0_14, %c0_15] : memref<128x1xf32, #tpu.memory_space<vmem>>, vector<128x1xf32>
    tpu.vector_store %arg7[%c0_14, %c0_15], %14 {strides = array<i32>} : memref<128x1xf32, #tpu.memory_space<vmem>>, vector<128x1xf32>,
    %24 = arith.addf %14, %22 : vector<128x1xf32>
    %c0_16 = arith.constant 0 : index
    %c0_17 = arith.constant 0 : index
    %25 = vector.load %arg8[%c0_16, %c0_17] : memref<128x1xf32, #tpu.memory_space<vmem>>, vector<128x1xf32>
    tpu.vector_store %arg8[%c0_16, %c0_17], %24 {strides = array<i32>} : memref<128x1xf32, #tpu.memory_space<vmem>>, vector<128x1xf32>,
    return
  }
  func.func @transform_0(%arg0: i32) -> (i32, i32) {
    %c0_i32 = arith.constant 0 : i32
    %c0_i32_0 = arith.constant 0 : i32
    return %arg0, %c0_i32 : i32, i32
  }
  func.func @transform_1(%arg0: i32) -> (i32, i32) {
    %c0_i32 = arith.constant 0 : i32
    %c0_i32_0 = arith.constant 0 : i32
    %c0_i32_1 = arith.constant 0 : i32
    return %c0_i32, %c0_i32_0 : i32, i32
  }
  func.func @transform_2(%arg0: i32) -> (i32, i32) {
    %c0_i32 = arith.constant 0 : i32
    %c0_i32_0 = arith.constant 0 : i32
    %c0_i32_1 = arith.constant 0 : i32
    return %c0_i32, %c0_i32_0 : i32, i32
  }
  func.func @transform_3(%arg0: i32) -> (i32, i32) {
    %c0_i32 = arith.constant 0 : i32
    %c0_i32_0 = arith.constant 0 : i32
    %c0_i32_1 = arith.constant 0 : i32
    return %c0_i32, %c0_i32_0 : i32, i32
  }
  func.func @transform_4(%arg0: i32) -> i32 {
    %c0_i32 = arith.constant 0 : i32
    %c0_i32_0 = arith.constant 0 : i32
    return %c0_i32 : i32
  }
  func.func @transform_5(%arg0: i32) -> (i32, i32) {
    %c0_i32 = arith.constant 0 : i32
    %c0_i32_0 = arith.constant 0 : i32
    return %arg0, %c0_i32 : i32, i32
  }
  func.func @transform_6(%arg0: i32) -> (i32, i32) {
    %c0_i32 = arith.constant 0 : i32
    %c0_i32_0 = arith.constant 0 : i32
    return %arg0, %c0_i32 : i32, i32
  }
  func.func @transform_7(%arg0: i32) -> (i32, i32) {
    %c0_i32 = arith.constant 0 : i32
    %c0_i32_0 = arith.constant 0 : i32
    return %arg0, %c0_i32 : i32, i32
  }
}

</mosaic_0001>

<bundles_post_ra>
// kernel: tpu_custom_call.1
= control target key start
LH: loop header
LB: loop body
LE: loop exit
PB: predicated region body
PF: predicated region fallthrough
CT: control target
= control target key end

     0   :  { %13 = vsyncpa [#allocation4], 0  ;;  %s946_s0 = inlined_call_operand.vmem [shape: bf16[128,64], index: 0, kind: input, shape index: {}]   ;;  %s947_s1 = inlined_call_operand.vmem [shape: bf16[64,128], index: 1, kind: input, shape index: {}]   ;;  %s948_s2 = inlined_call_operand.vmem [shape: f32[1,128], index: 2, kind: input, shape index: {}]   ;;  %s949_s3 = inlined_call_operand.vmem [shape: f32[2,128], index: 3, kind: input, shape index: {}]   ;;  %s950_s4 = inlined_call_operand.vmem [shape: f32[2], index: 4, kind: input, shape index: {}]   ;;  %s951_s5 = inlined_call_operand.hbm [shape: f32[128,128], index: 5, kind: output, shape index: {0}]   ;;  %s952_s6 = inlined_call_operand.vmem [shape: f32[128,1], index: 6, kind: output, shape index: {1}]   ;;  %s953_s7 = inlined_call_operand.vmem [shape: f32[128,1], index: 7, kind: output, shape index: {2}]  }
   0x1   :  { %14 = vsyncpa [#allocation3], 0  ;;  %s29_s26 = sshll.u32 %s950_s4, 4  ;;  %s30_s26 = int_to_ptr.vmem [resolvable:$true] %s29_s26 }
   0x2   :  { %s571_s27 = scalar_lea.vmem %s30_s26, 16  ;;  %p576_p1 = scmp.lt.s32.totalorder %s30_s26, %s30_s26 }
   0x3   :  { %p572_p0 = scmp.ne.s32.totalorder %s30_s26, %s571_s27  ;;  %p577_p2 = scmp.lt.s32.totalorder %s571_s27, %s571_s27 }
   0x5   :  { %p578_p3 = por %p577_p2, %p576_p1 }
   0x7   :  { %p579_p4 = pnand %p578_p3, %p572_p0 }
   0x9   :  { %582 = shalt.err (!%p579_p4)
}
   0xa   :  { %s609_s28 = smov [#allocation2]  }
   0xb   :  { %32 = dma.vmem_to_smem %s30_s26, 16, %s609_s28, [#allocation4]  }
   0xc   :  { %605 = dma.done.wait [#allocation4], 16  }
   0xd   :  { %606 = vsyncadd [#allocation4], 4294967280 }
   0xe   :  { %36 = sfence }
   0xf   :  { %v559_v0 = vld [vmem:[%s947_s1] sm:$0xff]   ;;  %v560_v1 = vld [vmem:[%s947_s1 + $0x8] sm:$0xff]   ;;  %v561_v2 = vld [vmem:[%s947_s1 + $0x10] sm:$0xff]   ;;  %vm133_vm0 = vcmask 523264  }
  0x10   :  { %523 = vmatprep.subr.bf16.mxu0 %v559_v0  ;;  %547 = vmatprep.subr.bf16.mxu1 %v559_v0  ;;  %v563_v3 = vld [vmem:[%s946_s0] sm:$0xff]   ;;  %v562_v5 = vld [vmem:[%s947_s1 + $0x18] sm:$0xff]   ;;  %v565_v6 = vld [vmem:[%s946_s0 + $0x8] sm:$0xff]  }
  0x11   :  { %524 = vmatpush3.bf16.msra.mxu0 %v559_v0  ;;  %551 = vmatpush3.bf16.msra.mxu1 %v559_v0  ;;  %v564_v4 = vld [vmem:[%s946_s0 + $0x20] sm:$0xff]   ;;  %v566_v7 = vld [vmem:[%s946_s0 + $0x28] sm:$0xff]   ;;  %v567_v8 = vld [vmem:[%s946_s0 + $0x10] sm:$0xff]  }
  0x12   :  { %525 = vmatprep.subr.bf16.mxu0 %v560_v1  ;;  %548 = vmatprep.subr.bf16.mxu1 %v560_v1  ;;  %v569_v9 = vld [vmem:[%s946_s0 + $0x30] sm:$0xff]   ;;  %v568_v10 = vld [vmem:[%s946_s0 + $0x18] sm:$0xff]   ;;  %v487_v12 = vld [vmem:[%s948_s2] ss:$0 sm:$0xff] }
  0x13   :  { %531 = vmatprep.mubr.msk.bf16.mxu0 %vm133_vm0, %v563_v3  ;;  %539 = vmatprep.mubr.msk.bf16.mxu1 %vm133_vm0, %v564_v4  ;;  %v570_v11 = vld [vmem:[%s946_s0 + $0x38] sm:$0xff]   ;;  %v706_v15 = vld [vmem:[%s949_s3] ss:$0 sm:$0xff]  ;;  %v719_v32 = vld [vmem:[%s949_s3 + $0x1] ss:$0 sm:$0xff]  ;;  %s610_s3 = smov [#allocation5]  }
  0x14   :  { %s467_s9 = sshll.u32 %s610_s3, 4  ;;  %s468_s9 = int_to_ptr.vmem [resolvable:$true] %s467_s9 }
  0x15   :  { %526 = vmatpush3.bf16.msra.mxu0 %v560_v1  ;;  %552 = vmatpush3.bf16.msra.mxu1 %v560_v1  ;;  %s583_s4 = scalar_lea.vmem %s468_s9, 2048  ;;  %p588_p6 = scmp.lt.s32.totalorder %s468_s9, %s468_s9 }
  0x16   :  { %527 = vmatprep.subr.bf16.mxu0 %v561_v2  ;;  %549 = vmatprep.subr.bf16.mxu1 %v561_v2  ;;  %p584_p5 = scmp.ne.s32.totalorder %s468_s9, %s583_s4  ;;  %p589_p7 = scmp.lt.s32.totalorder %s583_s4, %s583_s4 }
  0x18   :  { %p590_p8 = por %p589_p7, %p588_p6 }
  0x19   :  { %528 = vmatpush3.bf16.msra.mxu0 %v561_v2  ;;  %553 = vmatpush3.bf16.msra.mxu1 %v561_v2 }
  0x1a   :  { %529 = vmatprep.subr.bf16.mxu0 %v562_v5  ;;  %550 = vmatprep.subr.bf16.mxu1 %v562_v5  ;;  %p591_p9 = pnand %p590_p8, %p584_p5 }
  0x1d   :  { %530 = vmatpush3.bf16.msra.mxu0 %v562_v5  ;;  %554 = vmatpush3.bf16.msra.mxu1 %v562_v5 }
  0x20   :  { %532 = vmatmul.mubr.msk.bf16.vlgmr.msra.gmra.mrb[0].mxu0 %vm133_vm0, %v565_v6  ;;  %540 = vmatmul.mubr.msk.bf16.vlgmr.msra.gmra.mrb[0].mxu1 %vm133_vm0, %v566_v7 }
  0x21   :  { %535 = vmatprep.mubr.msk.bf16.mxu0 %vm133_vm0, %v567_v8  ;;  %543 = vmatprep.mubr.msk.bf16.mxu1 %vm133_vm0, %v569_v9 }
  0x28   :  { %536 = vmatmul.mubr.msk.bf16.gmra.mrb[4].mxu0 %vm133_vm0, %v568_v10  ;;  %544 = vmatmul.mubr.msk.bf16.gmra.mrb[4].mxu1 %vm133_vm0, %v570_v11 }
  0xf3   :  { %v533_v13 = vpop.f32.mrb[0].mxu0  ;;  %v541_v14 = vpop.f32.mrb[0].mxu1 }
  0xf4   :  { %v201_v16 = vadd.f32 %v533_v13, %v487_v12  ;;  %v233_v17 = vadd.f32 %v541_v14, %v487_v12  ;;  %v192_v18 = vpop.f32.mrb[1].mxu0  ;;  %v224_v19 = vpop.f32.mrb[1].mxu1 }
  0xf5   :  { %v708_v20 = vadd.f32 %v487_v12, %v192_v18  ;;  %v710_v21 = vadd.f32 %v487_v12, %v224_v19  ;;  %v534_v22 = vpop.f32.mrb[2].mxu0  ;;  %v542_v23 = vpop.f32.mrb[2].mxu1 }
  0xf6   :  { %257 = vst [vmem:[#allocation5 + $0x10] sm:$0xff] %v201_v16  ;;  %265 = vst [vmem:[#allocation5 + $0x50] sm:$0xff] %v233_v17  ;;  %v204_v24 = vadd.f32 %v534_v22, %v487_v12  ;;  %v236_v25 = vadd.f32 %v542_v23, %v487_v12  ;;  %v195_v26 = vpop.f32.mrb[3].mxu0  ;;  %v227_v27 = vpop.f32.mrb[3].mxu1  ;;  %v286_v28 = vmul.f32 %v706_v15, %v233_v17 }
  0xf7   :  { %v278_v29 = vmul.f32 %v706_v15, %v201_v16  ;;  %255 = vst [vmem:[#allocation5] sm:$0xff] %v708_v20  ;;  %263 = vst [vmem:[#allocation5 + $0x40] sm:$0xff] %v710_v21  ;;  %v196_v30 = vadd.f32 %v487_v12, %v195_v26  ;;  %v228_v31 = vadd.f32 %v487_v12, %v227_v27 }
  0xf8   :  { %258 = vst [vmem:[#allocation5 + $0x18] sm:$0xff] %v204_v24  ;;  %266 = vst [vmem:[#allocation5 + $0x58] sm:$0xff] %v236_v25  ;;  %312 = vadd.xlane.f32.xlu0 %v286_v28  ;;  %v349_v33 = vmul.f32 %v719_v32, %v201_v16  ;;  %v279_v34 = vmul.f32 %v706_v15, %v204_v24  ;;  %v357_v45 = vmul.f32 %v719_v32, %v233_v17 }
  0xf9   :  { %296 = vadd.xlane.f32.xlu1 %v278_v29  ;;  %256 = vst [vmem:[#allocation5 + $0x8] sm:$0xff] %v196_v30  ;;  %264 = vst [vmem:[#allocation5 + $0x48] sm:$0xff] %v228_v31  ;;  %v287_v46 = vmul.f32 %v706_v15, %v236_v25  ;;  %v350_v53 = vmul.f32 %v719_v32, %v204_v24  ;;  %v276_v54 = vmul.f32 %v706_v15, %v708_v20 }
  0xfa   :  { %v358_v55 = vmul.f32 %v719_v32, %v236_v25  ;;  %v284_v56 = vmul.f32 %v706_v15, %v710_v21  ;;  %v285_v57 = vmul.f32 %v706_v15, %v228_v31  ;;  %v347_v58 = vmul.f32 %v719_v32, %v708_v20 }
  0xfb   :  { %v537_v35 = vpop.f32.mrb[4].mxu0  ;;  %v545_v36 = vpop.f32.mrb[4].mxu1  ;;  %v348_v59 = vmul.f32 %v719_v32, %v196_v30  ;;  %v355_v60 = vmul.f32 %v719_v32, %v710_v21  ;;  %v356_v61 = vmul.f32 %v719_v32, %v228_v31  ;;  %v277_v62 = vmul.f32 %v706_v15, %v196_v30 }
  0xfc   :  { %367 = vadd.xlane.f32.xlu0 %v349_v33  ;;  %v217_v37 = vadd.f32 %v537_v35, %v487_v12  ;;  %v208_v38 = vpop.f32.mrb[5].mxu0  ;;  %v723_v39 = vadd.f32 %v545_v36, %v487_v12  ;;  %v240_v40 = vpop.f32.mrb[5].mxu1 }
  0xfd   :  { %298 = vadd.xlane.f32.xlu1 %v279_v34  ;;  %v725_v41 = vadd.f32 %v487_v12, %v208_v38  ;;  %v538_v42 = vpop.f32.mrb[6].mxu0  ;;  %v727_v43 = vadd.f32 %v487_v12, %v240_v40  ;;  %v546_v44 = vpop.f32.mrb[6].mxu1 }
  0xfe   :  { %261 = vst [vmem:[#allocation5 + $0x30] sm:$0xff] %v217_v37  ;;  %v220_v47 = vadd.f32 %v538_v42, %v487_v12  ;;  %v211_v48 = vpop.f32.mrb[7].mxu0  ;;  %269 = vst [vmem:[#allocation5 + $0x70] sm:$0xff] %v723_v39  ;;  %v252_v49 = vadd.f32 %v546_v44, %v487_v12  ;;  %v243_v50 = vpop.f32.mrb[7].mxu1  ;;  %v282_v0 = vmul.f32 %v706_v15, %v217_v37 }
  0xff   :  { %259 = vst [vmem:[#allocation5 + $0x20] sm:$0xff] %v725_v41  ;;  %v212_v51 = vadd.f32 %v487_v12, %v211_v48  ;;  %267 = vst [vmem:[#allocation5 + $0x60] sm:$0xff] %v727_v43  ;;  %v244_v52 = vadd.f32 %v487_v12, %v243_v50  ;;  %v290_v2 = vmul.f32 %v706_v15, %v723_v39 }
 0x100   :  { %383 = vadd.xlane.f32.xlu0 %v357_v45  ;;  %262 = vst [vmem:[#allocation5 + $0x38] sm:$0xff] %v220_v47  ;;  %270 = vst [vmem:[#allocation5 + $0x78] sm:$0xff] %v252_v49  ;;  %v283_v63 = vmul.f32 %v706_v15, %v220_v47  ;;  %v291_v1 = vmul.f32 %v706_v15, %v252_v49  ;;  %v354_v3 = vmul.f32 %v719_v32, %v220_v47 }
 0x101   :  { %314 = vadd.xlane.f32.xlu1 %v287_v46  ;;  %260 = vst [vmem:[#allocation5 + $0x28] sm:$0xff] %v212_v51  ;;  %268 = vst [vmem:[#allocation5 + $0x68] sm:$0xff] %v244_v52  ;;  %v353_v4 = vmul.f32 %v719_v32, %v217_v37  ;;  %v281_v5 = vmul.f32 %v706_v15, %v212_v51  ;;  %v280_v6 = vmul.f32 %v706_v15, %v725_v41 }
 0x102   :  { %v289_v7 = vmul.f32 %v706_v15, %v244_v52  ;;  %v288_v8 = vmul.f32 %v706_v15, %v727_v43  ;;  %v352_v9 = vmul.f32 %v719_v32, %v212_v51  ;;  %v351_v10 = vmul.f32 %v719_v32, %v725_v41 }
 0x103   :  { %v360_v11 = vmul.f32 %v719_v32, %v244_v52  ;;  %v359_v12 = vmul.f32 %v719_v32, %v727_v43  ;;  %v362_v13 = vmul.f32 %v719_v32, %v252_v49  ;;  %v361_v14 = vmul.f32 %v719_v32, %v723_v39 }
 0x104   :  { %292 = vadd.xlane.f32.xlu0 %v276_v54 }
 0x105   :  { %369 = vadd.xlane.f32.xlu1 %v350_v53 }
 0x108   :  { %308 = vadd.xlane.f32.xlu0 %v284_v56 }
 0x109   :  { %385 = vadd.xlane.f32.xlu1 %v358_v55 }
 0x10c   :  { %363 = vadd.xlane.f32.xlu0 %v347_v58 }
 0x10d   :  { %310 = vadd.xlane.f32.xlu1 %v285_v57 }
 0x110   :  { %379 = vadd.xlane.f32.xlu0 %v355_v60 }
 0x111   :  { %365 = vadd.xlane.f32.xlu1 %v348_v59 }
 0x114   :  { %294 = vadd.xlane.f32.xlu0 %v277_v62 }
 0x115   :  { %381 = vadd.xlane.f32.xlu1 %v356_v61 }
 0x118   :  { %304 = vadd.xlane.f32.xlu0 %v282_v0 }
 0x119   :  { %306 = vadd.xlane.f32.xlu1 %v283_v63 }
 0x11c   :  { %320 = vadd.xlane.f32.xlu0 %v290_v2 }
 0x11d   :  { %322 = vadd.xlane.f32.xlu1 %v291_v1 }
 0x120   :  { %375 = vadd.xlane.f32.xlu0 %v353_v4 }
 0x121   :  { %377 = vadd.xlane.f32.xlu1 %v354_v3 }
 0x124   :  { %300 = vadd.xlane.f32.xlu0 %v280_v6 }
 0x125   :  { %302 = vadd.xlane.f32.xlu1 %v281_v5 }
 0x128   :  { %316 = vadd.xlane.f32.xlu0 %v288_v8 }
 0x129   :  { %318 = vadd.xlane.f32.xlu1 %v289_v7 }
 0x12c   :  { %371 = vadd.xlane.f32.xlu0 %v351_v10 }
 0x12d   :  { %373 = vadd.xlane.f32.xlu1 %v352_v9 }
 0x130   :  { %387 = vadd.xlane.f32.xlu0 %v359_v12 }
 0x131   :  { %389 = vadd.xlane.f32.xlu1 %v360_v11 }
 0x134   :  { %391 = vadd.xlane.f32.xlu0 %v361_v14 }
 0x135   :  { %393 = vadd.xlane.f32.xlu1 %v362_v13 }
 0x136   :  { %594 = shalt.err (!%p591_p9)
}
 0x137   :  { %s595_s12 = scalar_lea.hbm %s951_s5, 2048 }
 0x138   :  { %p596_p10 = scmp.ne.s32.totalorder %s951_s5, %s595_s12  ;;  %p599_p11 = scmp.lt.u32.totalorder %s595_s12, %s951_s5 }
 0x13a   :  { %p601_p12 = pnand %p599_p11, %p596_p10 }
 0x13c   :  { %604 = shalt.err (!%p601_p12)
}
 0x13d   :  { %s611_s17 = smov 128   ;;  %s612_s18 = smov 8   ;;  %vm413_vm1 = vcmask 7168  }
 0x13e   :  { %473 = dma.vmem_to_hbm [thread:$0]  %s468_s9, 2048, %s951_s5, [#allocation3], %s611_s17, %s611_s17, %s612_s18  }
 0x13f   :  { %s324_s21 = sld [smem:[#allocation2]]  ;;  %s510_s22 = sld [smem:[#allocation2 + $0x1]] }
 0x145   :  { %v782_v15 = vstv %s324_s21  ;;  %v786_v20 = vstv %s510_s22 }
 0x185   :  { %v313_v16 = vpop.xlane.xlu0 %312 }
 0x186   :  { %v297_v17 = vpop.xlane.xlu1 %296  ;;  %v336_v18 = vadd.f32 %v782_v15, %v313_v16 }
 0x187   :  { %v328_v19 = vadd.f32 %v782_v15, %v297_v17 }
 0x188   :  { %424 = vst.msk [vmem:[%s952_s6 + $0x50] sm:$0xff] %vm413_vm1, %v336_v18 }
 0x189   :  { %416 = vst.msk [vmem:[%s952_s6 + $0x10] sm:$0xff] %vm413_vm1, %v328_v19  ;;  %v368_v21 = vpop.xlane.xlu0 %367 }
 0x18a   :  { %v299_v22 = vpop.xlane.xlu1 %298  ;;  %v399_v23 = vadd.f32 %v786_v20, %v368_v21 }
 0x18b   :  { %v329_v24 = vadd.f32 %v782_v15, %v299_v22 }
 0x18c   :  { %v432_v25 = vadd.f32 %v399_v23, %v328_v19 }
 0x18d   :  { %417 = vst.msk [vmem:[%s952_s6 + $0x18] sm:$0xff] %vm413_vm1, %v329_v24  ;;  %v384_v26 = vpop.xlane.xlu0 %383 }
 0x18e   :  { %v315_v27 = vpop.xlane.xlu1 %314  ;;  %448 = vst.msk [vmem:[%s953_s7 + $0x10] sm:$0xff] %vm413_vm1, %v432_v25  ;;  %v407_v28 = vadd.f32 %v786_v20, %v384_v26 }
 0x18f   :  { %v337_v29 = vadd.f32 %v782_v15, %v315_v27 }
 0x190   :  { %v440_v30 = vadd.f32 %v407_v28, %v336_v18 }
 0x191   :  { %425 = vst.msk [vmem:[%s952_s6 + $0x58] sm:$0xff] %vm413_vm1, %v337_v29  ;;  %v293_v32 = vpop.xlane.xlu0 %292 }
 0x192   :  { %v370_v31 = vpop.xlane.xlu1 %369  ;;  %456 = vst.msk [vmem:[%s953_s7 + $0x50] sm:$0xff] %vm413_vm1, %v440_v30  ;;  %v326_v34 = vadd.f32 %v782_v15, %v293_v32 }
 0x193   :  { %v400_v33 = vadd.f32 %v786_v20, %v370_v31 }
 0x194   :  { %414 = vst.msk [vmem:[%s952_s6] sm:$0xff] %vm413_vm1, %v326_v34 }
 0x195   :  { %v433_v35 = vadd.f32 %v400_v33, %v329_v24  ;;  %v309_v37 = vpop.xlane.xlu0 %308 }
 0x196   :  { %v386_v36 = vpop.xlane.xlu1 %385  ;;  %v334_v39 = vadd.f32 %v782_v15, %v309_v37 }
 0x197   :  { %449 = vst.msk [vmem:[%s953_s7 + $0x18] sm:$0xff] %vm413_vm1, %v433_v35  ;;  %v408_v38 = vadd.f32 %v786_v20, %v386_v36 }
 0x198   :  { %422 = vst.msk [vmem:[%s952_s6 + $0x40] sm:$0xff] %vm413_vm1, %v334_v39 }
 0x199   :  { %v441_v40 = vadd.f32 %v408_v38, %v337_v29  ;;  %v364_v42 = vpop.xlane.xlu0 %363 }
 0x19a   :  { %v311_v41 = vpop.xlane.xlu1 %310  ;;  %v397_v44 = vadd.f32 %v786_v20, %v364_v42 }
 0x19b   :  { %457 = vst.msk [vmem:[%s953_s7 + $0x58] sm:$0xff] %vm413_vm1, %v441_v40  ;;  %v335_v43 = vadd.f32 %v782_v15, %v311_v41 }
 0x19c   :  { %v430_v45 = vadd.f32 %v397_v44, %v326_v34 }
 0x19d   :  { %423 = vst.msk [vmem:[%s952_s6 + $0x48] sm:$0xff] %vm413_vm1, %v335_v43  ;;  %v380_v47 = vpop.xlane.xlu0 %379 }
 0x19e   :  { %v366_v46 = vpop.xlane.xlu1 %365  ;;  %446 = vst.msk [vmem:[%s953_s7] sm:$0xff] %vm413_vm1, %v430_v45  ;;  %v405_v48 = vadd.f32 %v786_v20, %v380_v47 }
 0x19f   :  { %v398_v52 = vadd.f32 %v786_v20, %v366_v46 }
 0x1a0   :  { %v438_v49 = vadd.f32 %v405_v48, %v334_v39 }
 0x1a1   :  { %v295_v51 = vpop.xlane.xlu0 %294 }
 0x1a2   :  { %v382_v50 = vpop.xlane.xlu1 %381  ;;  %454 = vst.msk [vmem:[%s953_s7 + $0x40] sm:$0xff] %vm413_vm1, %v438_v49  ;;  %v327_v54 = vadd.f32 %v782_v15, %v295_v51 }
 0x1a3   :  { %v406_v53 = vadd.f32 %v786_v20, %v382_v50 }
 0x1a4   :  { %415 = vst.msk [vmem:[%s952_s6 + $0x8] sm:$0xff] %vm413_vm1, %v327_v54  ;;  %v431_v56 = vadd.f32 %v398_v52, %v327_v54 }
 0x1a5   :  { %v439_v55 = vadd.f32 %v406_v53, %v335_v43  ;;  %v305_v58 = vpop.xlane.xlu0 %304 }
 0x1a6   :  { %v307_v57 = vpop.xlane.xlu1 %306  ;;  %447 = vst.msk [vmem:[%s953_s7 + $0x8] sm:$0xff] %vm413_vm1, %v431_v56  ;;  %v332_v60 = vadd.f32 %v782_v15, %v305_v58 }
 0x1a7   :  { %455 = vst.msk [vmem:[%s953_s7 + $0x48] sm:$0xff] %vm413_vm1, %v439_v55  ;;  %v333_v59 = vadd.f32 %v782_v15, %v307_v57 }
 0x1a8   :  { %420 = vst.msk [vmem:[%s952_s6 + $0x30] sm:$0xff] %vm413_vm1, %v332_v60 }
 0x1a9   :  { %421 = vst.msk [vmem:[%s952_s6 + $0x38] sm:$0xff] %vm413_vm1, %v333_v59  ;;  %v321_v62 = vpop.xlane.xlu0 %320 }
 0x1aa   :  { %v323_v61 = vpop.xlane.xlu1 %322  ;;  %v340_v0 = vadd.f32 %v782_v15, %v321_v62 }
 0x1ab   :  { %v341_v63 = vadd.f32 %v782_v15, %v323_v61 }
 0x1ac   :  { %428 = vst.msk [vmem:[%s952_s6 + $0x70] sm:$0xff] %vm413_vm1, %v340_v0 }
 0x1ad   :  { %429 = vst.msk [vmem:[%s952_s6 + $0x78] sm:$0xff] %vm413_vm1, %v341_v63  ;;  %v376_v2 = vpop.xlane.xlu0 %375 }
 0x1ae   :  { %v378_v1 = vpop.xlane.xlu1 %377  ;;  %v403_v4 = vadd.f32 %v786_v20, %v376_v2 }
 0x1af   :  { %v404_v3 = vadd.f32 %v786_v20, %v378_v1 }
 0x1b0   :  { %v436_v6 = vadd.f32 %v403_v4, %v332_v60 }
 0x1b1   :  { %v437_v5 = vadd.f32 %v404_v3, %v333_v59  ;;  %v301_v8 = vpop.xlane.xlu0 %300 }
 0x1b2   :  { %v303_v7 = vpop.xlane.xlu1 %302  ;;  %452 = vst.msk [vmem:[%s953_s7 + $0x30] sm:$0xff] %vm413_vm1, %v436_v6  ;;  %v330_v10 = vadd.f32 %v782_v15, %v301_v8 }
 0x1b3   :  { %453 = vst.msk [vmem:[%s953_s7 + $0x38] sm:$0xff] %vm413_vm1, %v437_v5  ;;  %v331_v9 = vadd.f32 %v782_v15, %v303_v7 }
 0x1b4   :  { %418 = vst.msk [vmem:[%s952_s6 + $0x20] sm:$0xff] %vm413_vm1, %v330_v10 }
 0x1b5   :  { %419 = vst.msk [vmem:[%s952_s6 + $0x28] sm:$0xff] %vm413_vm1, %v331_v9  ;;  %v317_v12 = vpop.xlane.xlu0 %316 }
 0x1b6   :  { %v319_v11 = vpop.xlane.xlu1 %318  ;;  %v338_v14 = vadd.f32 %v782_v15, %v317_v12 }
 0x1b7   :  { %v339_v13 = vadd.f32 %v782_v15, %v319_v11 }
 0x1b8   :  { %426 = vst.msk [vmem:[%s952_s6 + $0x60] sm:$0xff] %vm413_vm1, %v338_v14 }
 0x1b9   :  { %427 = vst.msk [vmem:[%s952_s6 + $0x68] sm:$0xff] %vm413_vm1, %v339_v13  ;;  %v372_v17 = vpop.xlane.xlu0 %371 }
 0x1ba   :  { %v374_v16 = vpop.xlane.xlu1 %373  ;;  %v401_v19 = vadd.f32 %v786_v20, %v372_v17 }
 0x1bb   :  { %v402_v18 = vadd.f32 %v786_v20, %v374_v16 }
 0x1bc   :  { %v434_v22 = vadd.f32 %v401_v19, %v330_v10 }
 0x1bd   :  { %v435_v21 = vadd.f32 %v402_v18, %v331_v9  ;;  %v388_v15 = vpop.xlane.xlu0 %387 }
 0x1be   :  { %v390_v23 = vpop.xlane.xlu1 %389  ;;  %450 = vst.msk [vmem:[%s953_s7 + $0x20] sm:$0xff] %vm413_vm1, %v434_v22  ;;  %v409_v25 = vadd.f32 %v786_v20, %v388_v15 }
 0x1bf   :  { %451 = vst.msk [vmem:[%s953_s7 + $0x28] sm:$0xff] %vm413_vm1, %v435_v21  ;;  %v410_v24 = vadd.f32 %v786_v20, %v390_v23 }
 0x1c0   :  { %v442_v27 = vadd.f32 %v409_v25, %v338_v14 }
 0x1c1   :  { %v443_v26 = vadd.f32 %v410_v24, %v339_v13  ;;  %v392_v29 = vpop.xlane.xlu0 %391 }
 0x1c2   :  { %v394_v28 = vpop.xlane.xlu1 %393  ;;  %458 = vst.msk [vmem:[%s953_s7 + $0x60] sm:$0xff] %vm413_vm1, %v442_v27  ;;  %v411_v31 = vadd.f32 %v786_v20, %v392_v29 }
 0x1c3   :  { %459 = vst.msk [vmem:[%s953_s7 + $0x68] sm:$0xff] %vm413_vm1, %v443_v26  ;;  %v412_v30 = vadd.f32 %v786_v20, %v394_v28 }
 0x1c4   :  { %v444_v33 = vadd.f32 %v411_v31, %v340_v0 }
 0x1c5   :  { %v445_v32 = vadd.f32 %v412_v30, %v341_v63 }
 0x1c6   :  { %460 = vst.msk [vmem:[%s953_s7 + $0x70] sm:$0xff] %vm413_vm1, %v444_v33 }
 0x1c7   :  { %461 = vst.msk [vmem:[%s953_s7 + $0x78] sm:$0xff] %vm413_vm1, %v445_v32 }
 0x1c8   :  { %607 = dma.done.wait [#allocation3], 2048  }
 0x1c9   :  { %608 = vsyncadd [#allocation3], 4294965248 }
 0x1ca   :  { %485 = vsyncpa [#allocation3], 1 }
 0x1cb   :  { %486 = vsyncpa [#allocation4], 1 }

</bundles_post_ra>
